<compile_context>
chip_gen: v7x
topology: tpu7x:2x2x1
jax: 0.10.0
libtpu: 0.0.40
codegen_flags: <defaults>
</compile_context>

<pallas_src>
import functools

import jax
import jax.numpy as jnp
from jax.experimental import pallas as pl
from jax.experimental.pallas import tpu as pltpu

_LANE = 128
_SUBLANE = 8
# Keep the VMEM-resident-table path comfortably inside the default scoped VMEM
# limit (16 MiB on v5e); tables are double-buffered by the pipeline, so budget
# the *physical* (lane/sublane padded) footprint times two.
_VMEM_TABLE_BUDGET_BYTES = 8 * 1024 * 1024


def _round_up(x, m):
    return (x + m - 1) // m * m


def _row_dot(u, v):
    # (block_b, E) * (block_b, E) -> (block_b, 1): VPU multiply + XLU lane reduce.
    return jnp.sum(u * v, axis=1, keepdims=True)


# ---------------------------------------------------------------------------
# Path A: small tables, resident in VMEM.  Gather = dynamic VMEM row copies.
# ---------------------------------------------------------------------------
def _mf_vmem_tables_kernel(u_idx_ref, v_idx_ref,   # SMEM scalar prefetch: (B_pad,) i32
                           u_tab_ref, v_tab_ref,   # VMEM: full tables (loaded once)
                           o_ref,                  # VMEM out tile: (block_b, 1) f32
                           u_buf, v_buf):          # VMEM staging: (block_b, E) f32
    block_b = u_buf.shape[0]
    base = pl.program_id(0) * block_b

    @pl.loop(0, block_b)
    def _(r):
        u_buf[pl.ds(r, 1), :] = u_tab_ref[pl.ds(u_idx_ref[base + r], 1), :]
        v_buf[pl.ds(r, 1), :] = v_tab_ref[pl.ds(v_idx_ref[base + r], 1), :]

    o_ref[...] = _row_dot(u_buf[...], v_buf[...])


# ---------------------------------------------------------------------------
# Path B: big tables stay in HBM; fused row-gather via per-row async DMAs.
# ---------------------------------------------------------------------------
def _mf_hbm_tables_kernel(u_idx_ref, v_idx_ref,    # SMEM scalar prefetch: (B_pad,) i32
                          u_tab_ref, v_tab_ref,    # HBM (pl.ANY): (rows, E) tables
                          o_ref,                   # VMEM out tile: (block_b, 1) f32
                          u_buf, v_buf, sem):      # staging (block_b, E) x2 + DMA sems
    block_b = u_buf.shape[0]
    base = pl.program_id(0) * block_b

    # Issue every row-gather DMA for this batch tile (fire and forget).
    @pl.loop(0, block_b)
    def _(r):
        pltpu.make_async_copy(
            u_tab_ref.at[pl.ds(u_idx_ref[base + r], 1)],
            u_buf.at[pl.ds(r, 1)], sem.at[0]).start()
        pltpu.make_async_copy(
            v_tab_ref.at[pl.ds(v_idx_ref[base + r], 1)],
            v_buf.at[pl.ds(r, 1)], sem.at[1]).start()

    # One aggregate wait per staging buffer: DMA semaphores count bytes, and
    # block_b single-row copies sum to exactly one full-buffer copy (dummy
    # descriptor wait — same pattern as the Pallas distributed guide).
    pltpu.make_async_copy(u_buf, u_buf, sem.at[0]).wait()
    pltpu.make_async_copy(v_buf, v_buf, sem.at[1]).wait()

    o_ref[...] = _row_dot(u_buf[...], v_buf[...])


@functools.partial(jax.jit, static_argnames=("block_b", "tables_in_vmem"))
def mf_forward(user_emb, item_emb, u_idx, v_idx, *, block_b=512, tables_in_vmem=None):
    """Forward pass of MatrixFactorization: (user_emb[u] * item_emb[v]).sum(1).

    user_emb: (num_users, E) f32, item_emb: (num_items, E) f32
    u_idx, v_idx: (B,) int32 indices
    returns: (B,) f32
    """
    B = u_idx.shape[0]
    num_users, E = user_emb.shape
    num_items, E_i = item_emb.shape
    assert E_i == E

    user_emb = user_emb.astype(jnp.float32)
    item_emb = item_emb.astype(jnp.float32)

    # Auto-select the gather strategy from the physical table footprint.
    if tables_in_vmem is None:
        e_phys = _round_up(E, _LANE)
        table_bytes = (_round_up(num_users, _SUBLANE)
                       + _round_up(num_items, _SUBLANE)) * e_phys * 4
        tables_in_vmem = 2 * table_bytes <= _VMEM_TABLE_BUDGET_BYTES  # x2: double-buffered

    # Ragged batch: clamp the tile for tiny batches, pad the index vectors to a
    # whole number of tiles; pad rows gather row 0 and are sliced off at the end.
    block_b = max(_SUBLANE, min(block_b, _round_up(B, _SUBLANE)))
    block_b = _round_up(block_b, _SUBLANE)
    num_blocks = pl.cdiv(B, block_b)
    b_pad = num_blocks * block_b
    u_idx = jnp.pad(u_idx.astype(jnp.int32), (0, b_pad - B))
    v_idx = jnp.pad(v_idx.astype(jnp.int32), (0, b_pad - B))

    out_spec = pl.BlockSpec((block_b, 1), lambda i, u_ids, v_ids: (i, 0))
    staging = lambda: pltpu.VMEM((block_b, E), jnp.float32)

    if tables_in_vmem:
        kernel = _mf_vmem_tables_kernel
        in_specs = [
            pl.BlockSpec((num_users, E), lambda i, u_ids, v_ids: (0, 0)),
            pl.BlockSpec((num_items, E), lambda i, u_ids, v_ids: (0, 0)),
        ]
        scratch_shapes = [staging(), staging()]
    else:
        kernel = _mf_hbm_tables_kernel
        in_specs = [
            pl.BlockSpec(memory_space=pl.ANY),   # user table stays in HBM
            pl.BlockSpec(memory_space=pl.ANY),   # item table stays in HBM
        ]
        scratch_shapes = [staging(), staging(), pltpu.SemaphoreType.DMA((2,))]

    grid_spec = pltpu.PrefetchScalarGridSpec(
        num_scalar_prefetch=2,
        grid=(num_blocks,),
        in_specs=in_specs,
        out_specs=out_spec,
        scratch_shapes=scratch_shapes,
    )

    out = pl.pallas_call(
        kernel,
        out_shape=jax.ShapeDtypeStruct((b_pad, 1), jnp.float32),
        grid_spec=grid_spec,
        compiler_params=pltpu.CompilerParams(
            dimension_semantics=("parallel",),
        ),
    )(u_idx, v_idx, user_emb, item_emb)
    return out[:B, 0]


def make_params(num_users, num_items, emb_size, key):
    # Matches nn.Embedding weights with .data.uniform_(0, 0.05).
    ku, ki = jax.random.split(key)
    user_emb = jax.random.uniform(
        ku, (num_users, emb_size), dtype=jnp.float32, minval=0.0, maxval=0.05)
    item_emb = jax.random.uniform(
        ki, (num_items, emb_size), dtype=jnp.float32, minval=0.0, maxval=0.05)
    return user_emb, item_emb


if __name__ == "__main__":
    num_users, num_items, emb_size = 40, 56, 100
    batch = 37   # deliberately not a multiple of the batch tile (exercises padding)

    key = jax.random.PRNGKey(0)
    kparam, ku_idx, kv_idx = jax.random.split(key, 3)

    user_emb, item_emb = make_params(num_users, num_items, emb_size, kparam)
    u_idx = jax.random.randint(ku_idx, (batch,), 0, num_users, dtype=jnp.int32)
    v_idx = jax.random.randint(kv_idx, (batch,), 0, num_items, dtype=jnp.int32)

    # Pure-JAX reference of the same semantics.
    ref = jnp.sum(
        jnp.take(user_emb, u_idx, axis=0) * jnp.take(item_emb, v_idx, axis=0),
        axis=1)

    # Path A (tables resident in VMEM, auto-selected) with a multi-block grid.
    out_vmem = jax.block_until_ready(
        mf_forward(user_emb, item_emb, u_idx, v_idx, block_b=16))
    # Path A again with the default tile (exercises batch clamping, single block).
    out_default = jax.block_until_ready(
        mf_forward(user_emb, item_emb, u_idx, v_idx))
    # Path B (large-table fallback: fused HBM row-gather DMAs), forced for testing.
    out_hbm = jax.block_until_ready(
        mf_forward(user_emb, item_emb, u_idx, v_idx, block_b=16, tables_in_vmem=False))

    assert out_vmem.shape == (batch,)
    assert out_default.shape == (batch,)
    assert out_hbm.shape == (batch,)
    assert jnp.allclose(out_vmem, ref, atol=1e-5, rtol=1e-5)
    assert jnp.allclose(out_default, ref, atol=1e-5, rtol=1e-5)
    assert jnp.allclose(out_hbm, ref, atol=1e-5, rtol=1e-5)

    print("KERNEL_OK")
</pallas_src>

<mosaic_0001>
module attributes {stable_mosaic.version = 11 : i64} {
  func.func @_mf_vmem_tables_kernel(%arg0: i32, %arg1: memref<48xi32, #tpu.memory_space<smem>>, %arg2: memref<48xi32, #tpu.memory_space<smem>>, %arg3: memref<40x100xf32, #tpu.memory_space<vmem>>, %arg4: memref<56x100xf32, #tpu.memory_space<vmem>>, %arg5: memref<16x1xf32, #tpu.memory_space<vmem>>, %arg6: memref<16x100xf32, #tpu.memory_space<vmem>>, %arg7: memref<16x100xf32, #tpu.memory_space<vmem>>) attributes {dimension_semantics = [#tpu.dimension_semantics<parallel>], iteration_bounds = array<i64: 3>, scalar_prefetch = 2 : i64, scratch_operands = 2 : i64, tpu.core_type = #tpu.core_type<tc>, window_params = [{pipeline_mode = #tpu.pipeline_mode<synchronous>, transform_indices = @transform_0, window_bounds = array<i64: 40, 100>}, {pipeline_mode = #tpu.pipeline_mode<synchronous>, transform_indices = @transform_1, window_bounds = array<i64: 56, 100>}, {transform_indices = @transform_2, window_bounds = array<i64: 16, 1>}]} {
    %c16_i32 = arith.constant 16 : i32
    %0 = arith.muli %arg0, %c16_i32 : i32
    %c0_i32 = arith.constant 0 : i32
    %c16_i32_0 = arith.constant 16 : i32
    %1 = arith.addi %c0_i32, %c16_i32_0 : i32
    %c1_i32 = arith.constant 1 : i32
    scf.for %arg8 = %c0_i32 to %1 step %c1_i32  : i32 {
      %c1_i32_7 = arith.constant 1 : i32
      %8 = arith.muli %arg8, %c1_i32_7 : i32
      %c0_i32_8 = arith.constant 0 : i32
      %9 = arith.addi %c0_i32_8, %8 : i32
      %10 = arith.addi %0, %9 : i32
      %11 = arith.index_cast %10 : i32 to index
      %12 = memref.load %arg1[%11] : memref<48xi32, #tpu.memory_space<smem>>
      %13 = arith.index_cast %12 : i32 to index
      %c0_9 = arith.constant 0 : index
      %14 = vector.load %arg3[%13, %c0_9] : memref<40x100xf32, #tpu.memory_space<vmem>>, vector<1x100xf32>
      %15 = arith.index_cast %9 : i32 to index
      %c0_10 = arith.constant 0 : index
      %16 = vector.load %arg6[%15, %c0_10] : memref<16x100xf32, #tpu.memory_space<vmem>>, vector<1x100xf32>
      tpu.vector_store %arg6[%15, %c0_10], %14 {strides = array<i32>} : memref<16x100xf32, #tpu.memory_space<vmem>>, vector<1x100xf32>,
      %17 = arith.addi %0, %9 : i32
      %18 = arith.index_cast %17 : i32 to index
      %19 = memref.load %arg2[%18] : memref<48xi32, #tpu.memory_space<smem>>
      %20 = arith.index_cast %19 : i32 to index
      %c0_11 = arith.constant 0 : index
      %21 = vector.load %arg4[%20, %c0_11] : memref<56x100xf32, #tpu.memory_space<vmem>>, vector<1x100xf32>
      %22 = arith.index_cast %9 : i32 to index
      %c0_12 = arith.constant 0 : index
      %23 = vector.load %arg7[%22, %c0_12] : memref<16x100xf32, #tpu.memory_space<vmem>>, vector<1x100xf32>
      tpu.vector_store %arg7[%22, %c0_12], %21 {strides = array<i32>} : memref<16x100xf32, #tpu.memory_space<vmem>>, vector<1x100xf32>,
    }
    %c16_i32_1 = arith.constant 16 : i32
    %c0 = arith.constant 0 : index
    %c0_2 = arith.constant 0 : index
    %2 = vector.load %arg6[%c0, %c0_2] : memref<16x100xf32, #tpu.memory_space<vmem>>, vector<16x100xf32>
    %c0_3 = arith.constant 0 : index
    %c0_4 = arith.constant 0 : index
    %3 = vector.load %arg7[%c0_3, %c0_4] : memref<16x100xf32, #tpu.memory_space<vmem>>, vector<16x100xf32>
    %4 = arith.mulf %2, %3 : vector<16x100xf32>
    %cst = arith.constant dense<0.000000e+00> : vector<16xf32>
    %5 = vector.multi_reduction <add>, %4, %cst [1] : vector<16x100xf32> to vector<16xf32>
    %6 = vector.shape_cast %5 : vector<16xf32> to vector<16x1xf32>
    %c0_5 = arith.constant 0 : index
    %c0_6 = arith.constant 0 : index
    %7 = vector.load %arg5[%c0_5, %c0_6] : memref<16x1xf32, #tpu.memory_space<vmem>>, vector<16x1xf32>
    tpu.vector_store %arg5[%c0_5, %c0_6], %6 {strides = array<i32>} : memref<16x1xf32, #tpu.memory_space<vmem>>, vector<16x1xf32>,
    return
  }
  func.func @transform_0(%arg0: i32, %arg1: memref<48xi32, #tpu.memory_space<smem>>, %arg2: memref<48xi32, #tpu.memory_space<smem>>) -> (i32, i32) {
    %c0_i32 = arith.constant 0 : i32
    %c0_i32_0 = arith.constant 0 : i32
    %c0_i32_1 = arith.constant 0 : i32
    return %c0_i32, %c0_i32_0 : i32, i32
  }
  func.func @transform_1(%arg0: i32, %arg1: memref<48xi32, #tpu.memory_space<smem>>, %arg2: memref<48xi32, #tpu.memory_space<smem>>) -> (i32, i32) {
    %c0_i32 = arith.constant 0 : i32
    %c0_i32_0 = arith.constant 0 : i32
    %c0_i32_1 = arith.constant 0 : i32
    return %c0_i32, %c0_i32_0 : i32, i32
  }
  func.func @transform_2(%arg0: i32, %arg1: memref<48xi32, #tpu.memory_space<smem>>, %arg2: memref<48xi32, #tpu.memory_space<smem>>) -> (i32, i32) {
    %c0_i32 = arith.constant 0 : i32
    %c0_i32_0 = arith.constant 0 : i32
    return %arg0, %c0_i32 : i32, i32
  }
}

</mosaic_0001>

<bundles_post_ra>
// kernel: mf_forward.1
= control target key start
LH: loop header
LB: loop body
LE: loop exit
PB: predicated region body
PF: predicated region fallthrough
CT: control target
= control target key end

     0   :  { %s568_s0 = inlined_call_operand.vmem [shape: s32[48], index: 0, kind: input, shape index: {}]   ;;  %s569_s2 = inlined_call_operand.hbm [shape: f32[40,100], index: 2, kind: input, shape index: {}]   ;;  %s570_s3 = inlined_call_operand.hbm [shape: f32[56,100], index: 3, kind: input, shape index: {}]   ;;  %s571_s4 = inlined_call_operand.vmem [shape: f32[48,1], index: 4, kind: output, shape index: {}]   ;;  %s572_s1 = inlined_call_operand.vmem [shape: s32[48], index: 1, kind: input, shape index: {}]  }
   0x1   :  { %s9_s17 = sshll.u32 %s568_s0, 4  ;;  %s13_s20 = sshll.u32 %s572_s1, 4  ;;  %s10_s17 = int_to_ptr.vmem [resolvable:$true] %s9_s17  ;;  %s14_s20 = int_to_ptr.vmem [resolvable:$true] %s13_s20 }
   0x2   :  { %s331_s21 = scalar_lea.vmem %s10_s17, 16  ;;  %p336_p1 = scmp.lt.s32.totalorder %s10_s17, %s10_s17 }
   0x3   :  { %p332_p0 = scmp.ne.s32.totalorder %s10_s17, %s331_s21  ;;  %p337_p2 = scmp.lt.s32.totalorder %s331_s21, %s331_s21 }
   0x5   :  { %p338_p3 = por %p337_p2, %p336_p1 }
   0x7   :  { %p339_p4 = pnand %p338_p3, %p332_p0 }
   0x9   :  { %342 = shalt.err (!%p339_p4)  }
   0xa   :  { %s437_s22 = smov [#allocation5]   ;;  %s343_s23 = scalar_lea.vmem %s14_s20, 16 }
   0xb   :  { %12 = dma.vmem_to_smem %s10_s17, 16, %s437_s22, [#allocation4] }
   0xc   :  { %p344_p5 = scmp.ne.s32.totalorder %s14_s20, %s343_s23  ;;  %p348_p6 = scmp.lt.s32.totalorder %s14_s20, %s14_s20 }
   0xd   :  { %p349_p7 = scmp.lt.s32.totalorder %s343_s23, %s343_s23 }
   0xf   :  { %p350_p8 = por %p349_p7, %p348_p6 }
  0x11   :  { %p351_p9 = pnand %p350_p8, %p344_p5 }
  0x13   :  { %354 = shalt.err (!%p351_p9)  }
  0x14   :  { %s438_s0 = smov [#allocation6]  }
  0x15   :  { %16 = dma.vmem_to_smem %s14_s20, 16, %s438_s0, [#allocation4] }
  0x16   :  { %419 = dma.done.wait [#allocation4], 32 }
  0x17   :  { %420 = vsyncadd [#allocation4], 4294967264 }
  0x18   :  { %18 = sfence }
  0x19   :  { %19 = vsyncpa [#allocation8], 0 }
  0x1a   :  { %20 = vsyncpa [#allocation10], 0  ;;  %s474_s1 = smov 0  }
  0x1b LB: > { %s480_s24 = sadd.s32 4294967295, %s431_s1   ;;  %p279_p10 = scmp.ge.s32.totalorder %s431_s1, 1  ;;  %s431_s1 = sphi %s474_s1, %s26_s1  }
  0x1c   : > { %p99_p11 = scmp.lt.s32.totalorder %s431_s1, 4  ;;  %s439_s25 = smov [#allocation7]  }
  0x1d   : > { %s111_s26 = sshll.u32 %s439_s25, 4  ;;  %p573_p13 = scmp.eq.s32.totalorder %s480_s24, 0  ;;  %s112_s26 = int_to_ptr.vmem [resolvable:$true] %s111_s26 }
  0x1e   : > { %p484_p12 = pnand %p279_p10, %p99_p11  ;;  %s440_s28 = smov [#allocation9]  }
  0x1f   : > { %s124_s29 = sshll.u32 %s440_s28, 4  ;;  %s355_s7 = scalar_lea.hbm %s569_s2, 640  ;;  %s497_s29 = int_to_ptr.vmem [resolvable:$true] %s124_s29 }
  0x20   : > { %s575_s27 = scalar_select %p484_p12, 1, 0 }
  0x21   : > { %p298_p0 = pneg %p484_p12  ;;  %p356_p2 = scmp.ne.s32.totalorder %s569_s2, %s355_s7 }
  0x22   : > { %p362_p6 = scmp.lt.u32.totalorder %s355_s7, %s569_s2 }
  0x23   : > { %p493_p1 = pnand %p573_p13, %p298_p0 }
  0x25   : > { %p357_p3 = pneg %p493_p1 }
  0x27   : > { %p358_p4 = pnand %p357_p3, %p356_p2 }
  0x29   : > { %p359_p5 = pneg %p358_p4 }
  0x2b   : > { %p364_p7 = pnand %p362_p6, %p359_p5 }
  0x2d   : > { %367 = shalt.err (!%p364_p7)
}
  0x2e   : > { %s368_s12 = scalar_lea.vmem %s112_s26, 640  ;;  %p376_p11 = scmp.lt.s32.totalorder %s112_s26, %s112_s26 }
  0x2f   : > { %p369_p8 = scmp.ne.s32.totalorder %s112_s26, %s368_s12  ;;  %p377_p0 = scmp.lt.s32.totalorder %s368_s12, %s368_s12 }
  0x31   : > { %p371_p9 = pnand %p369_p8, %p357_p3  ;;  %p378_p13 = por %p377_p0, %p376_p11 }
  0x33   : > { %p372_p10 = pneg %p371_p9 }
  0x35   : > { %p379_p12 = pnand %p378_p13, %p372_p10 }
  0x37   : > { %382 = shalt.err (!%p379_p12)
}
  0x38   : > { %s441_s13 = smov 128   ;;  %s442_s14 = smov 8  }
  0x39   : > { %301 = dma.hbm_to_vmem [thread:$0]  (!%p493_p1), %s569_s2, 640, %s112_s26, [#allocation8], %s441_s13, %s441_s13, %s442_s14  }
  0x3a   : > { %s383_s19 = scalar_lea.hbm %s570_s3, 896 }
  0x3b   : > { %p384_p2 = scmp.ne.s32.totalorder %s570_s3, %s383_s19  ;;  %p390_p4 = scmp.lt.u32.totalorder %s383_s19, %s570_s3 }
  0x3d   : > { %p386_p12 = pnand %p384_p2, %p357_p3 }
  0x3f   : > { %p387_p13 = pneg %p386_p12 }
  0x41   : > { %p392_p5 = pnand %p390_p4, %p387_p13 }
  0x43   : > { %395 = shalt.err (!%p392_p5)
}
  0x44   : > { %s396_s0 = scalar_lea.vmem %s497_s29, 896  ;;  %p404_p9 = scmp.lt.s32.totalorder %s497_s29, %s497_s29 }
  0x45   : > { %p397_p6 = scmp.ne.s32.totalorder %s497_s29, %s396_s0  ;;  %p405_p10 = scmp.lt.s32.totalorder %s396_s0, %s396_s0 }
  0x47   : > { %p399_p7 = pnand %p397_p6, %p357_p3  ;;  %p406_p11 = por %p405_p10, %p404_p9 }
  0x49   : > { %p400_p8 = pneg %p399_p7 }
  0x4b   : > { %p407_p0 = pnand %p406_p11, %p400_p8 }
  0x4d   : > { %410 = shalt.err (!%p407_p0)
}
  0x4e   : > { %304 = dma.hbm_to_vmem [thread:$0]  (!%p493_p1), %s570_s3, 896, %s497_s29, [#allocation10], %s441_s13, %s441_s13, %s442_s14  }
  0x4f   : > { %p577_p2 = scmp.ne.s32.totalorder %s575_s27, 0 }
  0x50   : > { %p578_p12 = scmp.eq.s32.totalorder (!%p577_p2), %s480_s24, 0 }
  0x51   : > { %140 = sbr.rel (%p577_p2) target bundleno = 267 (0x10b), region = 28 }
  0x58   : > { %422 = dma.done.wait (%p578_p12), [#allocation8], 640   ;;  %p579_p3 = pmov %p578_p12 }
  0x5a   : > { %424 = vsyncadd (%p579_p3), [#allocation8], 4294966656  ;;  %p580_p13 = pmov %p579_p3 }
  0x5b   : > { %p581_p4 = pmov %p579_p3 }
  0x5c   : > { %426 = dma.done.wait (%p580_p13), [#allocation10], 896  }
  0x5d   : > { %428 = vsyncadd (%p581_p4), [#allocation10], 4294966400  ;;  %s285_s28 = sshll.u32 %s480_s24, 1  ;;  %s287_s30 = sshll.u32 %s480_s24, 4 }
  0x5e   : > { %p162_p1 = scmp.lt.s32.totalorder %s285_s28, 5  ;;  %s433_s7 = smov 0  }
  0x60   : > { %s583_s28 = smov (!%p162_p1, %s285_s28), 5 }
  0x61   : > { %s286_s27 = sshll.u32 %s583_s28, 3 }
  0x62   : > { %s561_s6 = scalar_lea.vmem %s571_s4, %s286_s27 }
  0x63 LB: >> { %s174_s8 = sadd.s32 %s435_s7, %s287_s30  ;;  %vm179_vm0 = vcmask 811008   ;;  %s178_s24 = scalar_lea.vmem [#allocation2], %s435_s7  ;;  %s435_s7 = sphi %s433_s7, %s173_s7  }
  0x64   : >> { %s175_s9 = sld [smem:[#allocation5 + %s174_s8]]  ;;  %s184_s13 = scalar_lea.vmem [#allocation3], %s435_s7 }
  0x65   : >> { %s181_s10 = sld [smem:[#allocation6 + %s174_s8]]  ;;  %s173_s7 = sadd.s32 1, %s435_s7  }
  0x66   : >> { %p170_p5 = scmp.ge.s32.totalorder %s173_s7, 16  }
  0x67   : > { %vm192_vm1 = vcmask (%p170_p5), 818176   ;;  %vm199_vm2 = vcmask (%p170_p5), 7168  }
  0x68   : > { %172 = sbr.rel (!%p170_p5) target bundleno = 99 (0x63), region = 75 }
  0x6a   : >> { %s176_s11 = scalar_lea.vmem [#allocation7], %s175_s9 }
  0x6b   : >> { %v177_v0 = vld [vmem:[%s176_s11] sm:$0x1]  ;;  %s182_s12 = scalar_lea.vmem [#allocation9], %s181_s10 }
  0x6c   : >> { %v183_v1 = vld [vmem:[%s182_s12] sm:$0x1]  ;;  %180 = vst.msk [vmem:[%s178_s24] sm:$0x1] %vm179_vm0, %v177_v0 }
  0x6d   : >> { %185 = vst.msk [vmem:[%s184_s13] sm:$0x1] %vm179_vm0, %v183_v1 }
  0x73   : > { %v186_v2 = vld [vmem:[#allocation2] sm:$0xff]  ;;  %v187_v4 = vld [vmem:[#allocation2 + $0x8] sm:$0xff] }
  0x74   : > { %v188_v3 = vld [vmem:[#allocation3] sm:$0xff]  ;;  %v189_v6 = vld [vmem:[#allocation3 + $0x8] sm:$0xff] }
  0x75   : > { %v190_v5 = vmul.f32 %v188_v3, %v186_v2  ;;  %v191_v7 = vmul.f32 %v189_v6, %v187_v4 }
  0x77   : > { %v193_v8 = vsel %vm192_vm1, %v190_v5, 0.0  ;;  %v196_v9 = vsel %vm192_vm1, %v191_v7, 0.0 }
  0x78   : > { %194 = vadd.xlane.f32.xlu0 %v193_v8 }
  0x7c   : > { %197 = vadd.xlane.f32.xlu0 %v196_v9 }
 0x105   : > { %v195_v10 = vpop.xlane.xlu0 %194 }
 0x106   : > { %200 = vst.msk [vmem:[%s561_s6] sm:$0xff] %vm199_vm2, %v195_v10 }
 0x109   : > { %v198_v11 = vpop.xlane.xlu0 %197 }
 0x10a   : > { %201 = vst.msk [vmem:[%s561_s6 + $0x8] sm:$0xff] %vm199_vm2, %v198_v11 }
 0x10b PF: > { %s26_s1 = sadd.s32 1, %s431_s1  }
 0x10c   : > { %p23_p6 = scmp.ge.s32.totalorder %s26_s1, 5  }
 0x10e   :  { %25 = sbr.rel (!%p23_p6) target bundleno = 27 (0x1b), region = 86 }
 0x115   :  { %224 = vsyncpa [#allocation8], 1 }
 0x116   :  { %226 = vsyncpa [#allocation8 + $0x1], 1 }
 0x117   :  { %227 = vsyncpa [#allocation10], 1 }

</bundles_post_ra>
